<compile_context>
chip_gen: v7x
topology: tpu7x:2x2x1
jax: 0.10.0
libtpu: 0.0.40
codegen_flags: <defaults>
</compile_context>

<pallas_src>
import functools

import jax
import jax.numpy as jnp
from jax.experimental import pallas as pl
from jax.experimental.pallas import tpu as pltpu

SMOOTHING = 0.02


# ---------------------------------------------------------------------------
# Kernels
# ---------------------------------------------------------------------------

def _ls_dense_kernel(x_ref, t_ref, out_ref, *, n_rows, tile_rows, n_classes,
                     smoothing, confidence, has_remainder):
    """Dense (one-hot / soft) target tile -> per-tile partial loss sum."""
    x = x_ref[...].astype(jnp.float32)   # (TM, C)
    t = t_ref[...].astype(jnp.float32)   # (TM, C)

    # logZ = logsumexp(x, -1), numerically stable; no full logprobs tensor.
    m = jnp.max(x, axis=-1, keepdims=True)                       # (TM, 1)
    lse = jnp.log(jnp.sum(jnp.exp(x - m), axis=-1, keepdims=True))
    logz = m + lse                                               # (TM, 1)

    sum_t = jnp.sum(t, axis=-1, keepdims=True)                   # (TM, 1)
    sum_xt = jnp.sum(x * t, axis=-1, keepdims=True)              # (TM, 1)
    mean_x = jnp.sum(x, axis=-1, keepdims=True) * (1.0 / n_classes)

    nll_loss = logz * sum_t - sum_xt          # == sum(-logprobs * t, -1)
    smooth_loss = logz - mean_x               # == -mean(logprobs, -1)
    loss = confidence * nll_loss + smoothing * smooth_loss       # (TM, 1)

    if has_remainder:
        # Only the (TM, 1) loss is masked (padded rows of the edge block may
        # contain garbage -> NaN/inf per-row, never touching valid rows).
        i = pl.program_id(0)
        row = jax.lax.broadcasted_iota(jnp.int32, (tile_rows, 1), 0) + i * tile_rows
        loss = jnp.where(row < n_rows, loss, 0.0)

    out_ref[...] = jnp.sum(loss).reshape(1, 1, 1)


def _ls_labels_kernel(x_ref, lab_ref, out_ref, *, n_rows, tile_rows, n_classes,
                      smoothing, confidence, has_remainder):
    """Int32-label (strictly one-hot) fast path: only x is streamed densely."""
    x = x_ref[...].astype(jnp.float32)   # (TM, C)
    lab = lab_ref[...]                   # (TM, 1) int32

    m = jnp.max(x, axis=-1, keepdims=True)
    lse = jnp.log(jnp.sum(jnp.exp(x - m), axis=-1, keepdims=True))
    logz = m + lse                                               # (TM, 1)

    # Per-row gather x[row, lab[row]] via a lane-iota mask (no dense target).
    col = jax.lax.broadcasted_iota(jnp.int32, (tile_rows, n_classes), 1)
    x_at_label = jnp.sum(jnp.where(col == lab, x, 0.0), axis=-1, keepdims=True)
    mean_x = jnp.sum(x, axis=-1, keepdims=True) * (1.0 / n_classes)

    nll_loss = logz - x_at_label              # sum_t == 1 for one-hot labels
    smooth_loss = logz - mean_x
    loss = confidence * nll_loss + smoothing * smooth_loss       # (TM, 1)

    if has_remainder:
        i = pl.program_id(0)
        row = jax.lax.broadcasted_iota(jnp.int32, (tile_rows, 1), 0) + i * tile_rows
        loss = jnp.where(row < n_rows, loss, 0.0)

    out_ref[...] = jnp.sum(loss).reshape(1, 1, 1)


# ---------------------------------------------------------------------------
# Tiling / VMEM planning
# ---------------------------------------------------------------------------

def _vmem_capacity_bytes():
    try:
        return int(pltpu.get_tpu_info().vmem_capacity_bytes)
    except Exception:
        return 64 << 20   # v7x per-TC physical; conservative for v5e/v6e.


def _plan_tiling(n, c, x_itemsize, t_itemsize):
    """Pick (tile_rows, vmem_limit_bytes) from a generation-aware VMEM budget.

    Live bytes per tile row ≈
        2 * C * (x + t itemsize)   (double-buffered input DMA buffers)
      + 3 * C * 4                  (f32 working set: cast copies, x-m, exp)
    """
    cap = _vmem_capacity_bytes()
    vmem_limit = min(int(cap * 3 // 4), 96 << 20)

    bytes_per_row = 2 * c * (x_itemsize + t_itemsize) + 3 * c * 4
    budget = int(vmem_limit * 0.6)                 # headroom for output/pipeline
    tr = budget // max(bytes_per_row, 1)
    tr = max(8, (tr // 8) * 8)
    tr = min(tr, 1 << 16)                          # cap lifted (was 4096)

    if n <= 8:
        tr = n                                     # block == full row extent
    else:
        tr = min(tr, (n // 8) * 8)                 # multiple of 8, <= n

    # TODO(synk): for huge C (>=64K classes) even tile_rows=8 may exceed the
    # VMEM limit; the fix is an online-logsumexp inner pipeline over C chunks
    # so row tiles stay large. Not needed for typical class counts.
    return tr, vmem_limit


def _run(kernel_fn, x, second, second_cols, *, smoothing, tile_rows=None):
    n, c = x.shape
    confidence = 1.0 - smoothing

    if tile_rows is None:
        tile_rows, vmem_limit = _plan_tiling(
            n, c, jnp.dtype(x.dtype).itemsize,
            jnp.dtype(second.dtype).itemsize * second_cols // c
            if second_cols == c else 0)
    else:
        _, vmem_limit = _plan_tiling(n, c, jnp.dtype(x.dtype).itemsize, 4)

    num_tiles = pl.cdiv(n, tile_rows)
    has_remainder = (n % tile_rows) != 0

    kernel = functools.partial(
        kernel_fn,
        n_rows=n,
        tile_rows=tile_rows,
        n_classes=c,
        smoothing=float(smoothing),
        confidence=float(confidence),
        has_remainder=has_remainder,
    )

    partials = pl.pallas_call(
        kernel,
        out_shape=jax.ShapeDtypeStruct((num_tiles, 1, 1), jnp.float32),
        grid_spec=pltpu.PrefetchScalarGridSpec(
            num_scalar_prefetch=0,
            grid=(num_tiles,),
            in_specs=[
                pl.BlockSpec((tile_rows, c), lambda i: (i, 0)),
                pl.BlockSpec((tile_rows, second_cols), lambda i: (i, 0)),
            ],
            out_specs=pl.BlockSpec((1, 1, 1), lambda i: (i, 0, 0)),
        ),
        compiler_params=pltpu.CompilerParams(
            dimension_semantics=("parallel",),   # independent tiles -> both TCs (v7x)
            vmem_limit_bytes=vmem_limit,
        ),
    )(x, second)

    return jnp.sum(partials) / jnp.float32(n)


# ---------------------------------------------------------------------------
# Public wrappers
# ---------------------------------------------------------------------------

def label_smoothing_loss(x, target, *, smoothing=SMOOTHING, tile_rows=None):
    """Training-mode LabelSmoothing forward with dense (N, C) targets."""
    n, c = x.shape
    assert target.shape == (n, c)
    return _run(_ls_dense_kernel, x, target, c,
                smoothing=smoothing, tile_rows=tile_rows)


def label_smoothing_loss_from_labels(x, labels, *, smoothing=SMOOTHING,
                                     tile_rows=None):
    """Fast path for strictly one-hot targets given as int class indices."""
    n, c = x.shape
    assert labels.shape == (n,)
    lab = labels.astype(jnp.int32).reshape(n, 1)
    return _run(_ls_labels_kernel, x, lab, 1,
                smoothing=smoothing, tile_rows=tile_rows)


# TODO(synk): eval-mode branch (F.cross_entropy with integer class targets and
# full reduction semantics) is not kernelized; only the training-mode forward
# path is implemented here.


def _reference_loss(x, target, smoothing=SMOOTHING):
    x = x.astype(jnp.float32)
    target = target.astype(jnp.float32)
    logprobs = jax.nn.log_softmax(x, axis=-1)
    nll_loss = jnp.sum(-logprobs * target, axis=-1)
    smooth_loss = -jnp.mean(logprobs, axis=-1)
    loss = (1.0 - smoothing) * nll_loss + smoothing * smooth_loss
    return jnp.mean(loss)


if __name__ == "__main__":
    key = jax.random.PRNGKey(0)
    k_x, k_t, k_x2, k_t2 = jax.random.split(key, 4)

    # Primary small demo: batch of 16 rows, 32 classes (dense-target path,
    # matches the PyTorch training-branch forward exactly).
    N, C = 16, 32
    x = jax.random.normal(k_x, (N, C), dtype=jnp.float32)
    labels = jax.random.randint(k_t, (N,), 0, C)
    target = jax.nn.one_hot(labels, C, dtype=jnp.float32)

    loss = jax.block_until_ready(label_smoothing_loss(x, target))
    ref = _reference_loss(x, target)
    assert jnp.allclose(loss, ref, atol=1e-4, rtol=1e-4), (loss, ref)

    # Int32-label fast path (one-hot targets): must match the same reference.
    loss_int = jax.block_until_ready(label_smoothing_loss_from_labels(x, labels))
    assert jnp.allclose(loss_int, ref, atol=1e-4, rtol=1e-4), (loss_int, ref)

    # Ragged row count: exercises the cdiv grid + last-tile (TM,1) loss mask.
    N2, C2 = 13, 32
    x2 = jax.random.normal(k_x2, (N2, C2), dtype=jnp.float32)
    labels2 = jax.random.randint(k_t2, (N2,), 0, C2)
    target2 = jax.nn.one_hot(labels2, C2, dtype=jnp.float32)

    loss2 = jax.block_until_ready(label_smoothing_loss(x2, target2))
    ref2 = _reference_loss(x2, target2)
    assert jnp.allclose(loss2, ref2, atol=1e-4, rtol=1e-4), (loss2, ref2)

    loss2_int = jax.block_until_ready(
        label_smoothing_loss_from_labels(x2, labels2))
    assert jnp.allclose(loss2_int, ref2, atol=1e-4, rtol=1e-4), (loss2_int, ref2)

    print("KERNEL_OK")
</pallas_src>

<mosaic_0001>
module attributes {stable_mosaic.version = 11 : i64} {
  func.func @_ls_dense_kernel(%arg0: i32, %arg1: memref<16x32xf32, #tpu.memory_space<vmem>>, %arg2: memref<16x32xf32, #tpu.memory_space<vmem>>, %arg3: memref<1x1x1xf32, #tpu.memory_space<vmem>>) attributes {dimension_semantics = [#tpu.dimension_semantics<parallel>], iteration_bounds = array<i64: 1>, scalar_prefetch = 0 : i64, scratch_operands = 0 : i64, tpu.core_type = #tpu.core_type<tc>, window_params = [{transform_indices = @transform_0, window_bounds = array<i64: 16, 32>}, {transform_indices = @transform_1, window_bounds = array<i64: 16, 32>}, {transform_indices = @transform_2, window_bounds = array<i64: 1, 1, 1>}]} {
    %c0 = arith.constant 0 : index
    %c0_0 = arith.constant 0 : index
    %0 = vector.load %arg1[%c0, %c0_0] : memref<16x32xf32, #tpu.memory_space<vmem>>, vector<16x32xf32>
    %c0_1 = arith.constant 0 : index
    %c0_2 = arith.constant 0 : index
    %1 = vector.load %arg2[%c0_1, %c0_2] : memref<16x32xf32, #tpu.memory_space<vmem>>, vector<16x32xf32>
    %cst = arith.constant dense<0xFF800000> : vector<16xf32>
    %2 = vector.multi_reduction <maximumf>, %0, %cst [1] : vector<16x32xf32> to vector<16xf32>
    %3 = vector.shape_cast %2 : vector<16xf32> to vector<16x1xf32>
    %4 = vector.broadcast %3 : vector<16x1xf32> to vector<16x32xf32>
    %5 = arith.subf %0, %4 : vector<16x32xf32>
    %6 = math.exp %5 : vector<16x32xf32>
    %cst_3 = arith.constant dense<0.000000e+00> : vector<16xf32>
    %7 = vector.multi_reduction <add>, %6, %cst_3 [1] : vector<16x32xf32> to vector<16xf32>
    %8 = vector.shape_cast %7 : vector<16xf32> to vector<16x1xf32>
    %9 = math.log %8 : vector<16x1xf32>
    %10 = arith.addf %3, %9 : vector<16x1xf32>
    %cst_4 = arith.constant dense<0.000000e+00> : vector<16xf32>
    %11 = vector.multi_reduction <add>, %1, %cst_4 [1] : vector<16x32xf32> to vector<16xf32>
    %12 = vector.shape_cast %11 : vector<16xf32> to vector<16x1xf32>
    %13 = arith.mulf %0, %1 : vector<16x32xf32>
    %cst_5 = arith.constant dense<0.000000e+00> : vector<16xf32>
    %14 = vector.multi_reduction <add>, %13, %cst_5 [1] : vector<16x32xf32> to vector<16xf32>
    %15 = vector.shape_cast %14 : vector<16xf32> to vector<16x1xf32>
    %cst_6 = arith.constant dense<0.000000e+00> : vector<16xf32>
    %16 = vector.multi_reduction <add>, %0, %cst_6 [1] : vector<16x32xf32> to vector<16xf32>
    %17 = vector.shape_cast %16 : vector<16xf32> to vector<16x1xf32>
    %cst_7 = arith.constant 3.125000e-02 : f32
    %18 = vector.broadcast %cst_7 : f32 to vector<16x1xf32>
    %19 = arith.mulf %17, %18 : vector<16x1xf32>
    %20 = arith.mulf %10, %12 : vector<16x1xf32>
    %21 = arith.subf %20, %15 : vector<16x1xf32>
    %22 = arith.subf %10, %19 : vector<16x1xf32>
    %cst_8 = arith.constant 9.800000e-01 : f32
    %23 = vector.broadcast %cst_8 : f32 to vector<16x1xf32>
    %24 = arith.mulf %23, %21 : vector<16x1xf32>
    %cst_9 = arith.constant 2.000000e-02 : f32
    %25 = vector.broadcast %cst_9 : f32 to vector<16x1xf32>
    %26 = arith.mulf %25, %22 : vector<16x1xf32>
    %27 = arith.addf %24, %26 : vector<16x1xf32>
    %28 = vector.shape_cast %27 : vector<16x1xf32> to vector<1x16x1xf32>
    %cst_10 = arith.constant dense<0.000000e+00> : vector<1xf32>
    %29 = vector.multi_reduction <add>, %28, %cst_10 [1, 2] : vector<1x16x1xf32> to vector<1xf32>
    %30 = vector.shape_cast %29 : vector<1xf32> to vector<1x1x1xf32>
    %31 = vector.extract %30[0, 0, 0] : f32 from vector<1x1x1xf32>
    %32 = vector.broadcast %31 : f32 to vector<1x1x1xf32>
    %c0_11 = arith.constant 0 : index
    %c0_12 = arith.constant 0 : index
    %c0_13 = arith.constant 0 : index
    %33 = vector.load %arg3[%c0_11, %c0_12, %c0_13] : memref<1x1x1xf32, #tpu.memory_space<vmem>>, vector<1x1x1xf32>
    tpu.vector_store %arg3[%c0_11, %c0_12, %c0_13], %32 {strides = array<i32>} : memref<1x1x1xf32, #tpu.memory_space<vmem>>, vector<1x1x1xf32>,
    return
  }
  func.func @transform_0(%arg0: i32) -> (i32, i32) {
    %c0_i32 = arith.constant 0 : i32
    %c0_i32_0 = arith.constant 0 : i32
    return %arg0, %c0_i32 : i32, i32
  }
  func.func @transform_1(%arg0: i32) -> (i32, i32) {
    %c0_i32 = arith.constant 0 : i32
    %c0_i32_0 = arith.constant 0 : i32
    return %arg0, %c0_i32 : i32, i32
  }
  func.func @transform_2(%arg0: i32) -> (i32, i32, i32) {
    %c0_i32 = arith.constant 0 : i32
    %c0_i32_0 = arith.constant 0 : i32
    %c0_i32_1 = arith.constant 0 : i32
    return %arg0, %c0_i32, %c0_i32_0 : i32, i32, i32
  }
}

</mosaic_0001>

<bundles_post_ra>
// kernel: tpu_custom_call.1
= control target key start
LH: loop header
LB: loop body
LE: loop exit
PB: predicated region body
PF: predicated region fallthrough
CT: control target
= control target key end

     0   :  { %7 = vsyncpa [#allocation3], 0  ;;  %s288_s0 = inlined_call_operand.hbm [shape: f32[16,32], index: 0, kind: input, shape index: {}]   ;;  %s289_s1 = inlined_call_operand.hbm [shape: f32[16,32], index: 1, kind: input, shape index: {}]   ;;  %s290_s2 = inlined_call_operand.hbm [shape: f32[1,1,1], index: 2, kind: output, shape index: {}]  }
   0x1   :  { %8 = vsyncpa [#allocation6], 0 }
   0x2   :  { %9 = vsyncpa [#allocation4], 0  ;;  %s222_s9 = smov [#allocation2]   ;;  %s150_s13 = scalar_lea.hbm %s288_s0, 256 }
   0x3   :  { %s15_s10 = sshll.u32 %s222_s9, 4  ;;  %p151_p0 = scmp.ne.s32.totalorder %s288_s0, %s150_s13  ;;  %s16_s10 = int_to_ptr.vmem [resolvable:$true] %s15_s10 }
   0x4   :  { %p154_p1 = scmp.lt.u32.totalorder %s150_s13, %s288_s0 }
   0x6   :  { %p156_p2 = pnand %p154_p1, %p151_p0 }
   0x8   :  { %159 = shalt.err (!%p156_p2)
}
   0x9   :  { %s160_s18 = scalar_lea.vmem %s16_s10, 256  ;;  %p165_p4 = scmp.lt.s32.totalorder %s16_s10, %s16_s10 }
   0xa   :  { %p161_p3 = scmp.ne.s32.totalorder %s16_s10, %s160_s18  ;;  %p166_p5 = scmp.lt.s32.totalorder %s160_s18, %s160_s18 }
   0xc   :  { %p167_p6 = por %p166_p5, %p165_p4 }
   0xe   :  { %p168_p7 = pnand %p167_p6, %p161_p3 }
  0x10   :  { %171 = shalt.err (!%p168_p7)
}
  0x11   :  { %s223_s19 = smov 128   ;;  %s224_s20 = smov 8  }
  0x12   :  { %21 = dma.hbm_to_vmem [thread:$0]  %s288_s0, 256, %s16_s10, [#allocation3], %s223_s19, %s223_s19, %s224_s20  }
  0x13   :  { %s225_s23 = smov [#allocation5]   ;;  %s172_s27 = scalar_lea.hbm %s289_s1, 256 }
  0x14   :  { %s27_s24 = sshll.u32 %s225_s23, 4  ;;  %p173_p8 = scmp.ne.s32.totalorder %s289_s1, %s172_s27  ;;  %s28_s24 = int_to_ptr.vmem [resolvable:$true] %s27_s24 }
  0x15   :  { %p176_p9 = scmp.lt.u32.totalorder %s172_s27, %s289_s1 }
  0x17   :  { %p178_p10 = pnand %p176_p9, %p173_p8 }
  0x19   :  { %181 = shalt.err (!%p178_p10)
}
  0x1a   :  { %s182_s4 = scalar_lea.vmem %s28_s24, 256  ;;  %p187_p12 = scmp.lt.s32.totalorder %s28_s24, %s28_s24 }
  0x1b   :  { %p183_p11 = scmp.ne.s32.totalorder %s28_s24, %s182_s4  ;;  %p188_p13 = scmp.lt.s32.totalorder %s182_s4, %s182_s4 }
  0x1d   :  { %p189_p0 = por %p188_p13, %p187_p12 }
  0x1f   :  { %p190_p1 = pnand %p189_p0, %p183_p11 }
  0x21   :  { %193 = shalt.err (!%p190_p1)
}
  0x22   :  { %33 = dma.hbm_to_vmem [thread:$0]  %s289_s1, 256, %s28_s24, [#allocation6], %s223_s19, %s223_s19, %s224_s20  }
  0x23   :  { %216 = dma.done.wait [#allocation3], 256  }
  0x24   :  { %217 = vsyncadd [#allocation3], 4294967040 }
  0x25   :  { %218 = dma.done.wait [#allocation6], 256  }
  0x26   :  { %219 = vsyncadd [#allocation6], 4294967040  ;;  %vm44_vm0 = vcmask 261120   ;;  %v40_v0 = vld [vmem:[#allocation2] sm:$0xff]  ;;  %v41_v1 = vld [vmem:[#allocation2 + $0x8] sm:$0xff]  ;;  %vm103_vm1 = vcmask 7168  }
  0x27   :  { %v45_v2 = vsel %vm44_vm0, %v40_v0, -inf  ;;  %v48_v3 = vsel %vm44_vm0, %v41_v1, -inf  ;;  %v42_v4 = vld [vmem:[#allocation5] sm:$0xff]  ;;  %v83_v6 = vsel %vm44_vm0, %v40_v0, 0.0  ;;  %v43_v18 = vld [vmem:[#allocation5 + $0x8] sm:$0xff]  ;;  %v86_v21 = vsel %vm44_vm0, %v41_v1, 0.0 }
  0x28   :  { %46 = vmax.xlane.f32.xlu0 %v45_v2  ;;  %v69_v5 = vsel %vm44_vm0, %v42_v4, 0.0  ;;  %v75_v7 = vmul.f32 %v42_v4, %v40_v0  ;;  %v72_v20 = vsel %vm44_vm0, %v43_v18, 0.0  ;;  %v76_v22 = vmul.f32 %v43_v18, %v41_v1  ;;  %s226_s1 = smov [#allocation7]  }
  0x29   :  { %s125_s6 = sshll.u32 %s226_s1, 4  ;;  %vm117_vm2 = vcmask 0   ;;  %s126_s6 = int_to_ptr.vmem [resolvable:$true] %s125_s6 }
  0x2a   :  { %v77_v8 = vsel %vm44_vm0, %v75_v7, 0.0  ;;  %v80_v23 = vsel %vm44_vm0, %v76_v22, 0.0  ;;  %s194_s8 = scalar_lea.vmem %s126_s6, 16  ;;  %s198_s9 = scalar_lea.vmem %s126_s6, 32 }
  0x2b   :  { %p195_p2 = scmp.ne.s32.totalorder %s126_s6, %s194_s8  ;;  %p199_p3 = scmp.lt.s32.totalorder %s126_s6, %s126_s6 }
  0x2c   :  { %49 = vmax.xlane.f32.xlu0 %v48_v3  ;;  %p200_p4 = scmp.lt.s32.totalorder %s198_s9, %s194_s8 }
  0x2e   :  { %p201_p5 = por %p200_p4, %p199_p3 }
  0x30   :  { %70 = vadd.xlane.f32.xlu0 %v69_v5  ;;  %p202_p6 = pnand %p201_p5, %p195_p2 }
  0x34   :  { %84 = vadd.xlane.f32.xlu0 %v83_v6 }
  0x38   :  { %78 = vadd.xlane.f32.xlu0 %v77_v8 }
  0xb5   :  { %v47_v9 = vpop.xlane.xlu0 %46 }
  0xb6   :  { %v51_v10 = vsub.f32 %v40_v0, %v47_v9 }
  0xb8   :  { %v53_v11 = vmul.f32 1.442695, %v51_v10 }
  0xb9   :  { %v50_v12 = vpop.xlane.xlu0 %49 }
  0xba   :  { %142 = vpow2.f32 %v53_v11  ;;  %v52_v13 = vsub.f32 %v41_v1, %v50_v12 }
  0xbc   :  { %v55_v14 = vmul.f32 1.442695, %v52_v13 }
  0xbd   :  { %v71_v25 = vpop.xlane.xlu0 %70 }
  0xbe   :  { %144 = vpow2.f32 %v55_v14 }
  0xc1   :  { %v85_v28 = vpop.xlane.xlu0 %84 }
  0xc2   :  { %v89_v33 = vmul.f32 0.03125, %v85_v28 }
  0xc4   :  { %v143_v15 = vpop.eup %142 }
  0xc5   :  { %v57_v16 = vsel %vm44_vm0, %v143_v15, 0.0  ;;  %v79_v35 = vpop.xlane.xlu0 %78 }
  0xc6   :  { %58 = vadd.xlane.f32.xlu1 %v57_v16 }
  0xc8   :  { %v145_v17 = vpop.eup %144 }
  0xc9   :  { %v60_v19 = vsel %vm44_vm0, %v145_v17, 0.0 }
  0xca   :  { %61 = vadd.xlane.f32.xlu1 %v60_v19 }
  0xce   :  { %73 = vadd.xlane.f32.xlu1 %v72_v20 }
  0xd2   :  { %87 = vadd.xlane.f32.xlu1 %v86_v21 }
  0xd6   :  { %81 = vadd.xlane.f32.xlu1 %v80_v23 }
 0x153   :  { %v59_v24 = vpop.xlane.xlu1 %58 }
 0x154   :  { %146 = vlog2.f32 %v59_v24 }
 0x157   :  { %v62_v26 = vpop.xlane.xlu1 %61 }
 0x158   :  { %148 = vlog2.f32 %v62_v26 }
 0x15b   :  { %v74_v27 = vpop.xlane.xlu1 %73 }
 0x15e   :  { %v147_v29 = vpop.eup %146 }
 0x15f   :  { %v64_v30 = vmul.f32 0.6931472, %v147_v29  ;;  %v88_v31 = vpop.xlane.xlu1 %87 }
 0x160   :  { %v90_v38 = vmul.f32 0.03125, %v88_v31 }
 0x161   :  { %v67_v32 = vadd.f32 %v64_v30, %v47_v9 }
 0x162   :  { %v149_v34 = vpop.eup %148 }
 0x163   :  { %v66_v36 = vmul.f32 0.6931472, %v149_v34  ;;  %v91_v37 = vmul.f32 %v71_v25, %v67_v32  ;;  %v95_v40 = vsub.f32 %v67_v32, %v89_v33  ;;  %v82_v42 = vpop.xlane.xlu1 %81 }
 0x165   :  { %v68_v39 = vadd.f32 %v66_v36, %v50_v12  ;;  %v93_v41 = vsub.f32 %v91_v37, %v79_v35  ;;  %v99_v46 = vmul.f32 0.02, %v95_v40 }
 0x167   :  { %v92_v43 = vmul.f32 %v74_v27, %v68_v39  ;;  %v96_v44 = vsub.f32 %v68_v39, %v90_v38  ;;  %v97_v45 = vmul.f32 0.98, %v93_v41 }
 0x169   :  { %v94_v47 = vsub.f32 %v92_v43, %v82_v42  ;;  %v100_v48 = vmul.f32 0.02, %v96_v44  ;;  %v101_v49 = vadd.f32 %v99_v46, %v97_v45 }
 0x16b   :  { %v98_v50 = vmul.f32 0.98, %v94_v47  ;;  %v104_v52 = vsel %vm103_vm1, %v101_v49, 0.0 }
 0x16d   :  { %v102_v51 = vadd.f32 %v100_v48, %v98_v50 }
 0x16f   :  { %v105_v53 = vsel %vm103_vm1, %v102_v51, 0.0 }
 0x170   :  { %v106_v54 = vadd.f32 %v105_v53, %v104_v52 }
 0x172   :  { %107 = vadd.xlane.f32.xlu0 %v106_v54 }
 0x1ff   :  { %v108_v55 = vpop.xlane.xlu0 %107 }
 0x200   :  { %v109_v56 = vrot.slane %v108_v55, 4 }
 0x202   :  { %v110_v57 = vadd.f32 %v109_v56, %v108_v55 }
 0x204   :  { %v111_v58 = vrot.slane %v110_v57, 2 }
 0x206   :  { %v112_v59 = vadd.f32 %v111_v58, %v110_v57 }
 0x208   :  { %v113_v60 = vrot.slane %v112_v59, 1 }
 0x20a   :  { %v114_v61 = vadd.f32 %v113_v60, %v112_v59 }
 0x20c   :  { %135 = vpush %v114_v61 }
 0x23d   :  { %s136_s7 = spop %135 }
 0x23e   :  { %v116_v62 = vstv %s136_s7 }
 0x23f   :  { %118 = vst.msk [vmem:[#allocation7] sm:$0x1] %vm117_vm2, %v116_v62 }
 0x240   :  { %205 = shalt.err (!%p202_p6)
}
 0x241   :  { %s206_s12 = scalar_lea.hbm %s290_s2, 16 }
 0x242   :  { %p207_p7 = scmp.ne.s32.totalorder %s290_s2, %s206_s12  ;;  %p210_p8 = scmp.lt.u32.totalorder %s206_s12, %s290_s2 }
 0x244   :  { %p212_p9 = pnand %p210_p8, %p207_p7 }
 0x246   :  { %215 = shalt.err (!%p212_p9)
}
 0x247   :  { %128 = dma.vmem_to_hbm [thread:$0]  %s126_s6, 16, %s290_s2, [#allocation4]  }
 0x248   :  { %220 = dma.done.wait [#allocation4], 16  }
 0x249   :  { %221 = vsyncadd [#allocation4], 4294967280 }
 0x24a   :  { %132 = vsyncpa [#allocation3], 1 }
 0x24b   :  { %133 = vsyncpa [#allocation6], 1 }
 0x24c   :  { %134 = vsyncpa [#allocation4], 1 }

</bundles_post_ra>
